<compile_context>
chip_gen: v7x
topology: tpu7x:2x2x1
jax: 0.10.0
libtpu: 0.0.40
codegen_flags: <defaults>
</compile_context>

<pallas_src>
import functools

import jax
import jax.numpy as jnp
from jax.experimental import pallas as pl
from jax.experimental.pallas import tpu as pltpu


# ---------------------------------------------------------------------------
# Kernel 1: per-row (= per (n, c) pair) sum and sum-of-squares, accumulated
# over lane-dense HW tiles.  Rows live on sublanes, spatial on lanes.
# ---------------------------------------------------------------------------
def bn_stats_kernel(x_ref, sum_ref, sq_ref):
    @pl.when(pl.program_id(1) == 0)
    def _init():
        sum_ref[...] = jnp.zeros_like(sum_ref)
        sq_ref[...] = jnp.zeros_like(sq_ref)

    x = x_ref[...].astype(jnp.float32)                      # (rows, hw_tile)
    sum_ref[...] += jnp.sum(x, axis=-1, keepdims=True)      # lane reduce (XLU)
    sq_ref[...] += jnp.sum(x * x, axis=-1, keepdims=True)


# ---------------------------------------------------------------------------
# Kernel 2: fused normalize (y = x * scale + shift) + activation.
# Pure elementwise, lane-dense stores, nothing else on the hot path.
# ---------------------------------------------------------------------------
def bn_act_kernel(x_ref, scale_ref, shift_ref, o_ref, *, activation):
    y = x_ref[...].astype(jnp.float32) * scale_ref[...] + shift_ref[...]
    if activation == "relu":
        y = jnp.maximum(y, 0.0)
    elif activation == "swish":
        y = jax.nn.sigmoid(y) * y
    else:
        raise ValueError(f"Activation {activation} not implemented.")
    o_ref[...] = y.astype(o_ref.dtype)


def _pick_block(dim, unit, limit):
    """Largest multiple-of-`unit` divisor of `dim` that is <= limit, else `dim`.

    Falling back to the full dim is always legal (block == full array dim).
    """
    best = None
    cand = unit
    limit = min(dim, limit)
    while cand <= limit:
        if dim % cand == 0:
            best = cand
        cand += unit
    return best if best is not None else dim


_VMEM_BLOCK_BYTES = 4 * 1024 * 1024      # target per-block footprint
_VMEM_LIMIT_BYTES = 32 * 1024 * 1024     # explicit scoped-VMEM request (safe on v5e/v6e/v7x)


def batchnorm_act_forward(x_nchw, gamma, beta, *, eps=1e-4, activation="relu",
                          running_mean=None, running_var=None):
    """act(BatchNorm2d(x)).

    If running_mean/running_var are None, batch statistics are computed over
    (N, H, W) per channel (PyTorch training-mode forward); otherwise the
    provided running statistics are used (eval-mode forward).
    """
    N, C, H, W = x_nchw.shape
    NC, HW = N * C, H * W
    count = N * HW

    # NCHW-native: contiguous, zero-cost reshape. Row index = n*C + c.
    x2d = x_nchw.reshape(NC, HW)

    dtype_bytes = jnp.dtype(x_nchw.dtype).itemsize
    block_hw = _pick_block(HW, 128, 2048)
    block_rows = _pick_block(
        NC, 8, max(8, _VMEM_BLOCK_BYTES // (block_hw * dtype_bytes)))
    grid = (NC // block_rows, HW // block_hw)

    if running_mean is None:
        sums, sqs = pl.pallas_call(
            bn_stats_kernel,
            out_shape=(jax.ShapeDtypeStruct((NC, 1), jnp.float32),
                       jax.ShapeDtypeStruct((NC, 1), jnp.float32)),
            grid_spec=pltpu.PrefetchScalarGridSpec(
                num_scalar_prefetch=0,
                grid=grid,
                in_specs=[pl.BlockSpec((block_rows, block_hw),
                                       lambda r, h: (r, h))],
                out_specs=(pl.BlockSpec((block_rows, 1), lambda r, h: (r, 0)),
                           pl.BlockSpec((block_rows, 1), lambda r, h: (r, 0)))),
            compiler_params=pltpu.CompilerParams(
                dimension_semantics=("parallel", "arbitrary"),
                vmem_limit_bytes=_VMEM_LIMIT_BYTES),
        )(x2d)
        mean = jnp.sum(sums.reshape(N, C), axis=0) / count        # (C,)
        ex2 = jnp.sum(sqs.reshape(N, C), axis=0) / count
        var = ex2 - mean * mean          # biased variance, as BN training uses
    else:
        mean, var = running_mean, running_var

    # Fold BN into one per-channel FMA: y = x * scale + shift  (tiny C-sized math).
    inv_std = jax.lax.rsqrt(var.astype(jnp.float32) + eps)
    scale = gamma.astype(jnp.float32) * inv_std                   # (C,)
    shift = beta.astype(jnp.float32) - mean.astype(jnp.float32) * scale

    # Per-row (n, c) params; row index = n*C + c -> repeat per batch element.
    scale_rows = jnp.tile(scale, N).reshape(NC, 1)
    shift_rows = jnp.tile(shift, N).reshape(NC, 1)

    y2d = pl.pallas_call(
        functools.partial(bn_act_kernel, activation=activation),
        out_shape=jax.ShapeDtypeStruct((NC, HW), x_nchw.dtype),
        grid_spec=pltpu.PrefetchScalarGridSpec(
            num_scalar_prefetch=0,
            grid=grid,
            in_specs=[pl.BlockSpec((block_rows, block_hw), lambda r, h: (r, h)),
                      pl.BlockSpec((block_rows, 1), lambda r, h: (r, 0)),
                      pl.BlockSpec((block_rows, 1), lambda r, h: (r, 0))],
            out_specs=pl.BlockSpec((block_rows, block_hw), lambda r, h: (r, h))),
        compiler_params=pltpu.CompilerParams(
            dimension_semantics=("parallel", "parallel"),
            vmem_limit_bytes=_VMEM_LIMIT_BYTES),
    )(x2d, scale_rows, shift_rows)

    # TODO(synk): training-mode BN also updates running_mean/running_var with
    # momentum; that buffer side effect is not part of the returned tensor.
    return y2d.reshape(N, C, H, W)


def bn_act_reference(x, gamma, beta, *, eps=1e-4, activation="relu",
                     running_mean=None, running_var=None):
    """Pure-JAX reference mirroring act(nn.BatchNorm2d(x))."""
    if running_mean is None:
        mean = jnp.mean(x, axis=(0, 2, 3))
        var = jnp.mean((x - mean[None, :, None, None]) ** 2, axis=(0, 2, 3))
    else:
        mean, var = running_mean, running_var
    y = (x - mean[None, :, None, None]) * jax.lax.rsqrt(var + eps)[None, :, None, None]
    y = y * gamma[None, :, None, None] + beta[None, :, None, None]
    if activation == "relu":
        return jnp.maximum(y, 0.0)
    return jax.nn.sigmoid(y) * y


if __name__ == "__main__":
    N, C, H, W = 2, 4, 16, 16
    eps = 1e-4                              # module default epsilon=0.0001

    key = jax.random.PRNGKey(0)
    kx, kg, kb, km, kv = jax.random.split(key, 5)
    x = jax.random.normal(kx, (N, C, H, W), dtype=jnp.float32)
    gamma = 1.0 + 0.1 * jax.random.normal(kg, (C,), dtype=jnp.float32)
    beta = 0.1 * jax.random.normal(kb, (C,), dtype=jnp.float32)

    # Training-mode forward (batch statistics), default activation = ReLU.
    out_relu = jax.block_until_ready(
        batchnorm_act_forward(x, gamma, beta, eps=eps, activation="relu"))
    ref_relu = bn_act_reference(x, gamma, beta, eps=eps, activation="relu")
    assert out_relu.shape == (N, C, H, W)
    assert jnp.allclose(out_relu, ref_relu, atol=1e-5, rtol=1e-5)

    # Swish variant.
    out_sw = jax.block_until_ready(
        batchnorm_act_forward(x, gamma, beta, eps=eps, activation="swish"))
    ref_sw = bn_act_reference(x, gamma, beta, eps=eps, activation="swish")
    assert jnp.allclose(out_sw, ref_sw, atol=1e-5, rtol=1e-5)

    # Eval-mode forward (running statistics) with ReLU.
    rmean = 0.1 * jax.random.normal(km, (C,), dtype=jnp.float32)
    rvar = jnp.abs(1.0 + 0.1 * jax.random.normal(kv, (C,), dtype=jnp.float32))
    out_ev = jax.block_until_ready(
        batchnorm_act_forward(x, gamma, beta, eps=eps, activation="relu",
                              running_mean=rmean, running_var=rvar))
    ref_ev = bn_act_reference(x, gamma, beta, eps=eps, activation="relu",
                              running_mean=rmean, running_var=rvar)
    assert jnp.allclose(out_ev, ref_ev, atol=1e-5, rtol=1e-5)

    print("KERNEL_OK")
</pallas_src>

<mosaic_0001>
module attributes {stable_mosaic.version = 11 : i64} {
  func.func @bn_stats_kernel(%arg0: i32, %arg1: i32, %arg2: memref<8x256xf32, #tpu.memory_space<vmem>>, %arg3: memref<8x1xf32, #tpu.memory_space<vmem>>, %arg4: memref<8x1xf32, #tpu.memory_space<vmem>>) attributes {dimension_semantics = [#tpu.dimension_semantics<parallel>, #tpu.dimension_semantics<arbitrary>], iteration_bounds = array<i64: 1, 1>, scalar_prefetch = 0 : i64, scratch_operands = 0 : i64, tpu.core_type = #tpu.core_type<tc>, window_params = [{transform_indices = @transform_0, window_bounds = array<i64: 8, 256>}, {transform_indices = @transform_1, window_bounds = array<i64: 8, 1>}, {transform_indices = @transform_2, window_bounds = array<i64: 8, 1>}]} {
    %c0_i32 = arith.constant 0 : i32
    %0 = arith.cmpi eq, %arg1, %c0_i32 : i32
    %1 = arith.extui %0 : i1 to i32
    %c0_i32_0 = arith.constant 0 : i32
    %2 = arith.cmpi ne, %1, %c0_i32_0 : i32
    scf.if %2 {
      %cst_11 = arith.constant 0.000000e+00 : f32
      %15 = vector.broadcast %cst_11 : f32 to vector<8x1xf32>
      %c0_12 = arith.constant 0 : index
      %c0_13 = arith.constant 0 : index
      %16 = vector.load %arg3[%c0_12, %c0_13] : memref<8x1xf32, #tpu.memory_space<vmem>>, vector<8x1xf32>
      tpu.vector_store %arg3[%c0_12, %c0_13], %15 {strides = array<i32>} : memref<8x1xf32, #tpu.memory_space<vmem>>, vector<8x1xf32>,
      %cst_14 = arith.constant 0.000000e+00 : f32
      %17 = vector.broadcast %cst_14 : f32 to vector<8x1xf32>
      %c0_15 = arith.constant 0 : index
      %c0_16 = arith.constant 0 : index
      %18 = vector.load %arg4[%c0_15, %c0_16] : memref<8x1xf32, #tpu.memory_space<vmem>>, vector<8x1xf32>
      tpu.vector_store %arg4[%c0_15, %c0_16], %17 {strides = array<i32>} : memref<8x1xf32, #tpu.memory_space<vmem>>, vector<8x1xf32>,
    } else {
    }
    %c0 = arith.constant 0 : index
    %c0_1 = arith.constant 0 : index
    %3 = vector.load %arg2[%c0, %c0_1] : memref<8x256xf32, #tpu.memory_space<vmem>>, vector<8x256xf32>
    %c0_2 = arith.constant 0 : index
    %c0_3 = arith.constant 0 : index
    %4 = vector.load %arg3[%c0_2, %c0_3] : memref<8x1xf32, #tpu.memory_space<vmem>>, vector<8x1xf32>
    %cst = arith.constant dense<0.000000e+00> : vector<8xf32>
    %5 = vector.multi_reduction <add>, %3, %cst [1] : vector<8x256xf32> to vector<8xf32>
    %6 = vector.shape_cast %5 : vector<8xf32> to vector<8x1xf32>
    %7 = arith.addf %4, %6 : vector<8x1xf32>
    %c0_4 = arith.constant 0 : index
    %c0_5 = arith.constant 0 : index
    %8 = vector.load %arg3[%c0_4, %c0_5] : memref<8x1xf32, #tpu.memory_space<vmem>>, vector<8x1xf32>
    tpu.vector_store %arg3[%c0_4, %c0_5], %7 {strides = array<i32>} : memref<8x1xf32, #tpu.memory_space<vmem>>, vector<8x1xf32>,
    %c0_6 = arith.constant 0 : index
    %c0_7 = arith.constant 0 : index
    %9 = vector.load %arg4[%c0_6, %c0_7] : memref<8x1xf32, #tpu.memory_space<vmem>>, vector<8x1xf32>
    %10 = arith.mulf %3, %3 : vector<8x256xf32>
    %cst_8 = arith.constant dense<0.000000e+00> : vector<8xf32>
    %11 = vector.multi_reduction <add>, %10, %cst_8 [1] : vector<8x256xf32> to vector<8xf32>
    %12 = vector.shape_cast %11 : vector<8xf32> to vector<8x1xf32>
    %13 = arith.addf %9, %12 : vector<8x1xf32>
    %c0_9 = arith.constant 0 : index
    %c0_10 = arith.constant 0 : index
    %14 = vector.load %arg4[%c0_9, %c0_10] : memref<8x1xf32, #tpu.memory_space<vmem>>, vector<8x1xf32>
    tpu.vector_store %arg4[%c0_9, %c0_10], %13 {strides = array<i32>} : memref<8x1xf32, #tpu.memory_space<vmem>>, vector<8x1xf32>,
    return
  }
  func.func @transform_0(%arg0: i32, %arg1: i32) -> (i32, i32) {
    %c0_i32 = arith.constant 0 : i32
    return %arg0, %arg1 : i32, i32
  }
  func.func @transform_1(%arg0: i32, %arg1: i32) -> (i32, i32) {
    %c0_i32 = arith.constant 0 : i32
    %c0_i32_0 = arith.constant 0 : i32
    return %arg0, %c0_i32 : i32, i32
  }
  func.func @transform_2(%arg0: i32, %arg1: i32) -> (i32, i32) {
    %c0_i32 = arith.constant 0 : i32
    %c0_i32_0 = arith.constant 0 : i32
    return %arg0, %c0_i32 : i32, i32
  }
}

</mosaic_0001>

<bundles_post_ra>
// kernel: tpu_custom_call.1
= control target key start
LH: loop header
LB: loop body
LE: loop exit
PB: predicated region body
PF: predicated region fallthrough
CT: control target
= control target key end

     0   :  { %8 = vsyncpa [#allocation3], 0  ;;  %s81_s9 = smov [#allocation2]   ;;  %s132_s0 = inlined_call_operand.hbm [shape: f32[8,256], index: 0, kind: input, shape index: {}]   ;;  %s133_s1 = inlined_call_operand.vmem [shape: f32[8,1], index: 1, kind: output, shape index: {0}]   ;;  %s134_s2 = inlined_call_operand.vmem [shape: f32[8,1], index: 2, kind: output, shape index: {1}]  }
   0x1   :  { %s15_s10 = sshll.u32 %s81_s9, 4  ;;  %s57_s13 = scalar_lea.hbm %s132_s0, 256  ;;  %s16_s10 = int_to_ptr.vmem [resolvable:$true] %s15_s10 }
   0x2   :  { %p58_p0 = scmp.ne.s32.totalorder %s132_s0, %s57_s13  ;;  %p61_p1 = scmp.lt.u32.totalorder %s57_s13, %s132_s0 }
   0x4   :  { %p63_p2 = pnand %p61_p1, %p58_p0 }
   0x6   :  { %66 = shalt.err (!%p63_p2)
}
   0x7   :  { %s67_s18 = scalar_lea.vmem %s16_s10, 256  ;;  %p72_p4 = scmp.lt.s32.totalorder %s16_s10, %s16_s10 }
   0x8   :  { %p68_p3 = scmp.ne.s32.totalorder %s16_s10, %s67_s18  ;;  %p73_p5 = scmp.lt.s32.totalorder %s67_s18, %s67_s18 }
   0xa   :  { %p74_p6 = por %p73_p5, %p72_p4 }
   0xc   :  { %p75_p7 = pnand %p74_p6, %p68_p3 }
   0xe   :  { %78 = shalt.err (!%p75_p7)
}
   0xf   :  { %18 = dma.hbm_to_vmem [thread:$0]  %s132_s0, 256, %s16_s10, [#allocation3]  }
  0x10   :  { %79 = dma.done.wait [#allocation3], 256  }
  0x11   :  { %80 = vsyncadd [#allocation3], 4294967040  ;;  %vm26_vm0 = vcmask 7168   ;;  %v82_v0 = vmov 0.0   ;;  %v29_v1 = vld [vmem:[#allocation2] sm:$0xff]  ;;  %v30_v2 = vld [vmem:[#allocation2 + $0x8] sm:$0xff] }
  0x12   :  { %27 = vst.msk [vmem:[%s133_s1] sm:$0xff] %vm26_vm0, %v82_v0  ;;  %28 = vst.msk [vmem:[%s134_s2] sm:$0xff] %vm26_vm0, %v82_v0  ;;  %v32_v3 = vadd.f32 %v30_v2, %v29_v1  ;;  %v39_v4 = vmul.f32 %v29_v1, %v29_v1  ;;  %v40_v5 = vmul.f32 %v30_v2, %v30_v2 }
  0x14   :  { %33 = vadd.xlane.f32.xlu0 %v32_v3  ;;  %v41_v6 = vadd.f32 %v40_v5, %v39_v4 }
  0x18   :  { %42 = vadd.xlane.f32.xlu0 %v41_v6 }
  0x19   :  { %v31_v7 = vld [vmem:[%s133_s1] sm:$0xff] }
  0x1a   :  { %v38_v10 = vld [vmem:[%s134_s2] sm:$0xff] }
  0xa1   :  { %v34_v8 = vpop.xlane.xlu0 %33 }
  0xa2   :  { %v35_v9 = vadd.f32 %v34_v8, %v31_v7 }
  0xa4   :  { %37 = vst.msk [vmem:[%s133_s1] sm:$0xff] %vm26_vm0, %v35_v9 }
  0xa5   :  { %v43_v11 = vpop.xlane.xlu0 %42 }
  0xa6   :  { %v44_v12 = vadd.f32 %v43_v11, %v38_v10 }
  0xa8   :  { %45 = vst.msk [vmem:[%s134_s2] sm:$0xff] %vm26_vm0, %v44_v12 }
  0xa9   :  { %54 = vsyncpa [#allocation3], 1 }

</bundles_post_ra>
